<compile_context>
chip_gen: v7x
topology: tpu7x:2x2x1
jax: 0.10.0
libtpu: 0.0.40
codegen_flags: <defaults>
</compile_context>

<pallas_src>
from itertools import permutations

import numpy as np
import jax
import jax.numpy as jnp
from jax.experimental import pallas as pl
from jax.experimental.pallas import tpu as pltpu


def _round_up(x: int, m: int) -> int:
    return ((x + m - 1) // m) * m


def _cdiv(a: int, b: int) -> int:
    return -(-a // b)


def _make_weight_matrices(M: int):
    """Static one-hot matrices encoding the permutation bookkeeping (lane-dense layout).

    wt : (PM_pad, M_pad)  wt[p*M + j, j]          = +1  (tile target coord j into slot (p,j))
    wp : (PM_pad, M_pad)  wp[p*M + j, perm[p][j]] = -1  (subtract permuted prediction coord)
    g  : (P, PM_pad)      g[p, p*M + j]           = 1/M (mean matched distance per perm)
    Padded rows/cols are zero: they yield zero matched distances and zero group-sum
    contributions, so no masking is required downstream.
    """
    perms = list(permutations(range(M)))
    P = len(perms)
    PM_pad = _round_up(P * M, 8)
    M_pad = _round_up(M, 8)
    wt = np.zeros((PM_pad, M_pad), dtype=np.float32)
    wp = np.zeros((PM_pad, M_pad), dtype=np.float32)
    g = np.zeros((P, PM_pad), dtype=np.float32)
    inv_m = 1.0 / M
    for p, sigma in enumerate(perms):
        for j in range(M):
            r = p * M + j
            wt[r, j] = 1.0
            wp[r, sigma[j]] = -1.0
            g[p, r] = inv_m
    return wt, wp, g, P, PM_pad, M_pad


def _cartesian_loss_kernel(ta_ref, pa_ref, td_ref, pd_ref,
                           wt_ref, wp_ref, g_ref, out_ref):
    # Lane-dense (M_pad, TB) tiles: batch lies on the lane axis.
    tx = jnp.cos(ta_ref[...]) * td_ref[...]
    ty = jnp.sin(ta_ref[...]) * td_ref[...]
    px = jnp.cos(pa_ref[...]) * pd_ref[...]
    py = jnp.sin(pa_ref[...]) * pd_ref[...]

    wt = wt_ref[...]
    wp = wp_ref[...]
    # Fused tile / permute / subtract on the MXU: (PM_pad, M_pad) @ (M_pad, TB).
    ex = (jnp.dot(wt, tx, preferred_element_type=jnp.float32)
          + jnp.dot(wp, px, preferred_element_type=jnp.float32))     # (PM_pad, TB)
    ey = (jnp.dot(wt, ty, preferred_element_type=jnp.float32)
          + jnp.dot(wp, py, preferred_element_type=jnp.float32))

    dist = jnp.sqrt(ex * ex + ey * ey)                                # (PM_pad, TB)

    # Mean matched distance per permutation; the 1/M scale is folded into g.
    per_perm = jnp.dot(g_ref[...], dist,
                       preferred_element_type=jnp.float32)            # (P, TB)

    # Best permutation per sample (sublane min), summed over this batch tile.
    best = jnp.min(per_perm, axis=0, keepdims=True)                   # (1, TB)
    partial = jnp.sum(best)

    # Dense lane-aligned (8, 128) partial-sum tile; wrapper reads element [0, 0].
    out_ref[...] = jnp.full(out_ref.shape, partial, dtype=out_ref.dtype)


def _choose_tb(B: int, PM_pad: int, tb_cap: int) -> int:
    tb_cap = max(128, (tb_cap // 128) * 128)
    # v7x (64 MiB VMEM) safe cap: ~4 live f32 (PM_pad, TB) intermediates <= ~24 MiB.
    vmem_budget = 24 * 1024 * 1024
    tb_vmem = max(128, (vmem_budget // (PM_pad * 16)) // 128 * 128)
    # For small/medium B keep tiles <= ceil(B/2) columns so >= 2 grid steps exist and
    # both v7x TensorCores get work (no effect on single-core v5e/v6e).
    tb_split = max(128, _round_up(_cdiv(B, 2), 128))
    return min(tb_cap, tb_vmem, tb_split)


def cartesian_loss(predictions_angle, targets_angle,
                   predictions_distance, targets_distance, *, tb: int = 1024):
    assert predictions_angle.shape == targets_angle.shape, \
        "only the M_pred == M_target branch is implemented"
    B, M = targets_angle.shape

    wt_np, wp_np, g_np, P, PM_pad, M_pad = _make_weight_matrices(M)
    wt = jnp.asarray(wt_np)          # (PM_pad, M_pad)
    wp = jnp.asarray(wp_np)          # (PM_pad, M_pad)
    g = jnp.asarray(g_np)            # (P, PM_pad)

    TB = _choose_tb(B, PM_pad, tb)
    num_tiles = _cdiv(B, TB)
    B_pad = num_tiles * TB

    def _prep(a):
        # Transpose so batch lies on the lane axis; zero-pad the ragged last tile and
        # the M axis to a sublane multiple (zero angle/distance rows -> zero coords ->
        # zero matched distance -> zero contribution to the summed loss).
        a = jnp.asarray(a, dtype=jnp.float32).T                        # (M, B)
        return jnp.pad(a, ((0, M_pad - M), (0, B_pad - B)))

    ta = _prep(targets_angle)
    pa = _prep(predictions_angle)
    td = _prep(targets_distance)
    pd = _prep(predictions_distance)

    data_spec = pl.BlockSpec((M_pad, TB), lambda i: (0, i))
    out = pl.pallas_call(
        _cartesian_loss_kernel,
        out_shape=jax.ShapeDtypeStruct((num_tiles * 8, 128), jnp.float32),
        grid=(num_tiles,),
        in_specs=[
            data_spec, data_spec, data_spec, data_spec,                # ta, pa, td, pd
            pl.BlockSpec((PM_pad, M_pad), lambda i: (0, 0)),           # wt (constant)
            pl.BlockSpec((PM_pad, M_pad), lambda i: (0, 0)),           # wp (constant)
            pl.BlockSpec((P, PM_pad), lambda i: (0, 0)),               # g  (constant)
        ],
        out_specs=pl.BlockSpec((8, 128), lambda i: (i, 0)),
        compiler_params=pltpu.CompilerParams(
            dimension_semantics=("parallel",),
            vmem_limit_bytes=32 * 1024 * 1024,
        ),
    )(ta, pa, td, pd, wt, wp, g)

    partials = out.reshape(num_tiles, 8, 128)[:, 0, 0]                 # (num_tiles,)
    return jnp.sum(partials)


def _reference(pa, ta, pd, td):
    """Pure-JAX reference mirroring the PyTorch forward (equal-M branch)."""
    B, M = ta.shape
    perms = jnp.asarray(list(permutations(range(M))), dtype=jnp.int32)     # (P, M)
    coords_true = jnp.stack((jnp.cos(ta) * td, jnp.sin(ta) * td), axis=2)  # (B, M, 2)
    coords_pred = jnp.stack((jnp.cos(pa) * pd, jnp.sin(pa) * pd), axis=2)  # (B, M, 2)
    pred_perm = coords_pred[:, perms]                                      # (B, P, M, 2)
    err = coords_true[:, None, :, :] - pred_perm
    loss = jnp.sqrt(jnp.sum(err ** 2, axis=-1))                            # (B, P, M)
    loss = jnp.mean(loss, axis=-1)                                         # (B, P)
    loss = jnp.min(loss, axis=-1)                                          # (B,)
    return jnp.sum(loss)


def _make_inputs(key, B, M):
    k1, k2, k3, k4 = jax.random.split(key, 4)
    pa = jax.random.uniform(k1, (B, M), jnp.float32, minval=-np.pi / 3, maxval=np.pi / 3)
    ta = jax.random.uniform(k2, (B, M), jnp.float32, minval=-np.pi / 3, maxval=np.pi / 3)
    pd = jax.random.uniform(k3, (B, M), jnp.float32, minval=1.0, maxval=10.0)
    td = jax.random.uniform(k4, (B, M), jnp.float32, minval=1.0, maxval=10.0)
    return pa, ta, pd, td


if __name__ == "__main__":
    M = 4                                   # 4! = 24 permutations

    # Small test (single tile, batch padded 2 -> 128 lanes).
    pa, ta, pd, td = _make_inputs(jax.random.PRNGKey(0), 2, M)
    out = jax.block_until_ready(cartesian_loss(pa, ta, pd, td))
    ref = jax.block_until_ready(_reference(pa, ta, pd, td))
    assert np.allclose(np.asarray(out), np.asarray(ref), rtol=1e-5, atol=1e-4), \
        f"mismatch (B=2): kernel={out} ref={ref}"

    # Multi-tile test (exercises batch tiling, padding and per-tile partial sums).
    pa2, ta2, pd2, td2 = _make_inputs(jax.random.PRNGKey(1), 300, M)
    out2 = jax.block_until_ready(cartesian_loss(pa2, ta2, pd2, td2, tb=256))
    ref2 = jax.block_until_ready(_reference(pa2, ta2, pd2, td2))
    assert np.allclose(np.asarray(out2), np.asarray(ref2), rtol=1e-5, atol=1e-2), \
        f"mismatch (B=300): kernel={out2} ref={ref2}"

    print("KERNEL_OK")
</pallas_src>

<mosaic_0001>
module attributes {stable_mosaic.version = 11 : i64} {
  func.func @_cartesian_loss_kernel(%arg0: i32, %arg1: memref<8x128xf32, #tpu.memory_space<vmem>>, %arg2: memref<8x128xf32, #tpu.memory_space<vmem>>, %arg3: memref<8x128xf32, #tpu.memory_space<vmem>>, %arg4: memref<8x128xf32, #tpu.memory_space<vmem>>, %arg5: memref<96x8xf32, #tpu.memory_space<vmem>>, %arg6: memref<96x8xf32, #tpu.memory_space<vmem>>, %arg7: memref<24x96xf32, #tpu.memory_space<vmem>>, %arg8: memref<8x128xf32, #tpu.memory_space<vmem>>) attributes {dimension_semantics = [#tpu.dimension_semantics<parallel>], iteration_bounds = array<i64: 1>, scalar_prefetch = 0 : i64, scratch_operands = 0 : i64, tpu.core_type = #tpu.core_type<tc>, window_params = [{transform_indices = @transform_0, window_bounds = array<i64: 8, 128>}, {transform_indices = @transform_1, window_bounds = array<i64: 8, 128>}, {transform_indices = @transform_2, window_bounds = array<i64: 8, 128>}, {transform_indices = @transform_3, window_bounds = array<i64: 8, 128>}, {pipeline_mode = #tpu.pipeline_mode<synchronous>, transform_indices = @transform_4, window_bounds = array<i64: 96, 8>}, {pipeline_mode = #tpu.pipeline_mode<synchronous>, transform_indices = @transform_5, window_bounds = array<i64: 96, 8>}, {pipeline_mode = #tpu.pipeline_mode<synchronous>, transform_indices = @transform_6, window_bounds = array<i64: 24, 96>}, {transform_indices = @transform_7, window_bounds = array<i64: 8, 128>}]} {
    %c0 = arith.constant 0 : index
    %c0_0 = arith.constant 0 : index
    %0 = vector.load %arg1[%c0, %c0_0] : memref<8x128xf32, #tpu.memory_space<vmem>>, vector<8x128xf32>
    %1 = math.cos %0 : vector<8x128xf32>
    %c0_1 = arith.constant 0 : index
    %c0_2 = arith.constant 0 : index
    %2 = vector.load %arg3[%c0_1, %c0_2] : memref<8x128xf32, #tpu.memory_space<vmem>>, vector<8x128xf32>
    %3 = arith.mulf %1, %2 : vector<8x128xf32>
    %c0_3 = arith.constant 0 : index
    %c0_4 = arith.constant 0 : index
    %4 = vector.load %arg1[%c0_3, %c0_4] : memref<8x128xf32, #tpu.memory_space<vmem>>, vector<8x128xf32>
    %5 = math.sin %4 : vector<8x128xf32>
    %c0_5 = arith.constant 0 : index
    %c0_6 = arith.constant 0 : index
    %6 = vector.load %arg3[%c0_5, %c0_6] : memref<8x128xf32, #tpu.memory_space<vmem>>, vector<8x128xf32>
    %7 = arith.mulf %5, %6 : vector<8x128xf32>
    %c0_7 = arith.constant 0 : index
    %c0_8 = arith.constant 0 : index
    %8 = vector.load %arg2[%c0_7, %c0_8] : memref<8x128xf32, #tpu.memory_space<vmem>>, vector<8x128xf32>
    %9 = math.cos %8 : vector<8x128xf32>
    %c0_9 = arith.constant 0 : index
    %c0_10 = arith.constant 0 : index
    %10 = vector.load %arg4[%c0_9, %c0_10] : memref<8x128xf32, #tpu.memory_space<vmem>>, vector<8x128xf32>
    %11 = arith.mulf %9, %10 : vector<8x128xf32>
    %c0_11 = arith.constant 0 : index
    %c0_12 = arith.constant 0 : index
    %12 = vector.load %arg2[%c0_11, %c0_12] : memref<8x128xf32, #tpu.memory_space<vmem>>, vector<8x128xf32>
    %13 = math.sin %12 : vector<8x128xf32>
    %c0_13 = arith.constant 0 : index
    %c0_14 = arith.constant 0 : index
    %14 = vector.load %arg4[%c0_13, %c0_14] : memref<8x128xf32, #tpu.memory_space<vmem>>, vector<8x128xf32>
    %15 = arith.mulf %13, %14 : vector<8x128xf32>
    %c0_15 = arith.constant 0 : index
    %c0_16 = arith.constant 0 : index
    %16 = vector.load %arg5[%c0_15, %c0_16] : memref<96x8xf32, #tpu.memory_space<vmem>>, vector<96x8xf32>
    %c0_17 = arith.constant 0 : index
    %c0_18 = arith.constant 0 : index
    %17 = vector.load %arg6[%c0_17, %c0_18] : memref<96x8xf32, #tpu.memory_space<vmem>>, vector<96x8xf32>
    %cst = arith.constant dense<0.000000e+00> : vector<96x128xf32>
    %18 = tpu.matmul %16, %3, %cst {dimension_numbers = #tpu.dot_dimension_numbers<[1], [0], [0], [1], [0, 0, 1, 1], [], []>} : vector<96x8xf32>, vector<8x128xf32>, vector<96x128xf32> -> vector<96x128xf32>
    %cst_19 = arith.constant dense<0.000000e+00> : vector<96x128xf32>
    %19 = tpu.matmul %17, %11, %cst_19 {dimension_numbers = #tpu.dot_dimension_numbers<[1], [0], [0], [1], [0, 0, 1, 1], [], []>} : vector<96x8xf32>, vector<8x128xf32>, vector<96x128xf32> -> vector<96x128xf32>
    %20 = arith.addf %18, %19 : vector<96x128xf32>
    %cst_20 = arith.constant dense<0.000000e+00> : vector<96x128xf32>
    %21 = tpu.matmul %16, %7, %cst_20 {dimension_numbers = #tpu.dot_dimension_numbers<[1], [0], [0], [1], [0, 0, 1, 1], [], []>} : vector<96x8xf32>, vector<8x128xf32>, vector<96x128xf32> -> vector<96x128xf32>
    %cst_21 = arith.constant dense<0.000000e+00> : vector<96x128xf32>
    %22 = tpu.matmul %17, %15, %cst_21 {dimension_numbers = #tpu.dot_dimension_numbers<[1], [0], [0], [1], [0, 0, 1, 1], [], []>} : vector<96x8xf32>, vector<8x128xf32>, vector<96x128xf32> -> vector<96x128xf32>
    %23 = arith.addf %21, %22 : vector<96x128xf32>
    %24 = arith.mulf %20, %20 : vector<96x128xf32>
    %25 = arith.mulf %23, %23 : vector<96x128xf32>
    %26 = arith.addf %24, %25 : vector<96x128xf32>
    %27 = math.sqrt %26 : vector<96x128xf32>
    %c0_22 = arith.constant 0 : index
    %c0_23 = arith.constant 0 : index
    %28 = vector.load %arg7[%c0_22, %c0_23] : memref<24x96xf32, #tpu.memory_space<vmem>>, vector<24x96xf32>
    %cst_24 = arith.constant dense<0.000000e+00> : vector<24x128xf32>
    %29 = tpu.matmul %28, %27, %cst_24 {dimension_numbers = #tpu.dot_dimension_numbers<[1], [0], [0], [1], [0, 0, 1, 1], [], []>} : vector<24x96xf32>, vector<96x128xf32>, vector<24x128xf32> -> vector<24x128xf32>
    %cst_25 = arith.constant dense<0x7F800000> : vector<128xf32>
    %30 = vector.multi_reduction <minimumf>, %29, %cst_25 [0] : vector<24x128xf32> to vector<128xf32>
    %31 = vector.shape_cast %30 : vector<128xf32> to vector<1x128xf32>
    %32 = vector.shape_cast %31 : vector<1x128xf32> to vector<1x1x128xf32>
    %cst_26 = arith.constant dense<0.000000e+00> : vector<1xf32>
    %33 = vector.multi_reduction <add>, %32, %cst_26 [1, 2] : vector<1x1x128xf32> to vector<1xf32>
    %34 = vector.shape_cast %33 : vector<1xf32> to vector<1x1x1xf32>
    %35 = vector.extract %34[0, 0, 0] : f32 from vector<1x1x1xf32>
    %36 = vector.broadcast %35 : f32 to vector<8x128xf32>
    %c0_27 = arith.constant 0 : index
    %c0_28 = arith.constant 0 : index
    %37 = vector.load %arg8[%c0_27, %c0_28] : memref<8x128xf32, #tpu.memory_space<vmem>>, vector<8x128xf32>
    tpu.vector_store %arg8[%c0_27, %c0_28], %36 {strides = array<i32>} : memref<8x128xf32, #tpu.memory_space<vmem>>, vector<8x128xf32>,
    return
  }
  func.func @transform_0(%arg0: i32) -> (i32, i32) {
    %c0_i32 = arith.constant 0 : i32
    %c0_i32_0 = arith.constant 0 : i32
    return %c0_i32, %arg0 : i32, i32
  }
  func.func @transform_1(%arg0: i32) -> (i32, i32) {
    %c0_i32 = arith.constant 0 : i32
    %c0_i32_0 = arith.constant 0 : i32
    return %c0_i32, %arg0 : i32, i32
  }
  func.func @transform_2(%arg0: i32) -> (i32, i32) {
    %c0_i32 = arith.constant 0 : i32
    %c0_i32_0 = arith.constant 0 : i32
    return %c0_i32, %arg0 : i32, i32
  }
  func.func @transform_3(%arg0: i32) -> (i32, i32) {
    %c0_i32 = arith.constant 0 : i32
    %c0_i32_0 = arith.constant 0 : i32
    return %c0_i32, %arg0 : i32, i32
  }
  func.func @transform_4(%arg0: i32) -> (i32, i32) {
    %c0_i32 = arith.constant 0 : i32
    %c0_i32_0 = arith.constant 0 : i32
    %c0_i32_1 = arith.constant 0 : i32
    return %c0_i32, %c0_i32_0 : i32, i32
  }
  func.func @transform_5(%arg0: i32) -> (i32, i32) {
    %c0_i32 = arith.constant 0 : i32
    %c0_i32_0 = arith.constant 0 : i32
    %c0_i32_1 = arith.constant 0 : i32
    return %c0_i32, %c0_i32_0 : i32, i32
  }
  func.func @transform_6(%arg0: i32) -> (i32, i32) {
    %c0_i32 = arith.constant 0 : i32
    %c0_i32_0 = arith.constant 0 : i32
    %c0_i32_1 = arith.constant 0 : i32
    return %c0_i32, %c0_i32_0 : i32, i32
  }
  func.func @transform_7(%arg0: i32) -> (i32, i32) {
    %c0_i32 = arith.constant 0 : i32
    %c0_i32_0 = arith.constant 0 : i32
    return %arg0, %c0_i32 : i32, i32
  }
}

</mosaic_0001>

<bundles_post_ra>
// kernel: tpu_custom_call.1
= control target key start
LH: loop header
LB: loop body
LE: loop exit
PB: predicated region body
PF: predicated region fallthrough
CT: control target
= control target key end

     0   :  { %vm473_vm0 = vcmask 64512   ;;  %s2079_s0 = inlined_call_operand.vmem [shape: f32[8,128], index: 0, kind: input, shape index: {}]   ;;  %s2080_s1 = inlined_call_operand.vmem [shape: f32[8,128], index: 1, kind: input, shape index: {}]   ;;  %s2081_s2 = inlined_call_operand.vmem [shape: f32[8,128], index: 2, kind: input, shape index: {}]   ;;  %s2082_s3 = inlined_call_operand.vmem [shape: f32[8,128], index: 3, kind: input, shape index: {}]   ;;  %s2083_s4 = inlined_call_operand.vmem [shape: f32[96,8], index: 4, kind: input, shape index: {}]   ;;  %s2084_s5 = inlined_call_operand.vmem [shape: f32[96,8], index: 5, kind: input, shape index: {}]   ;;  %s2085_s6 = inlined_call_operand.vmem [shape: f32[24,96], index: 6, kind: input, shape index: {}]   ;;  %s2086_s7 = inlined_call_operand.hbm [shape: f32[8,128], index: 7, kind: output, shape index: {}]  }
   0x1   :  { %v1714_v0 = vld [vmem:[%s2080_s1] sm:$0xff]  ;;  %v1728_v4 = vld [vmem:[%s2084_s5 + $0x50] sm:$0xff] }
   0x2   :  { %v1719_v1 = vld [vmem:[%s2084_s5] sm:$0xff]  ;;  %v239_v2 = vand.u32 2147483647, %v1714_v0  ;;  %v242_v3 = vand.u32 2139095040, %v1714_v0  ;;  %1445 = vmatprep.mubr.msk.f32.mxu1 %vm473_vm0, %v1728_v4 }
   0x3   :  { %1430 = vmatprep.mubr.msk.f32.mxu0 %vm473_vm0, %v1719_v1  ;;  %v1735_v6 = vld [vmem:[%s2079_s0] sm:$0xff] }
   0x4   :  { %v243_v5 = vshrl.u32 %v242_v3, 23  ;;  %v246_v7 = vand.u32 8388607, %v239_v2  ;;  %v28_v8 = vand.u32 2147483647, %v1735_v6  ;;  %v31_v9 = vand.u32 2139095040, %v1735_v6 }
   0x6   :  { %v1302_v10 = vadd.s32 4294967169, %v243_v5  ;;  %v32_v11 = vshrl.u32 %v31_v9, 23  ;;  %v247_v13 = vor.u32 8388608, %v246_v7  ;;  %v1743_v15 = vand.u32 8388607, %v28_v8 }
   0x8   :  { %v249_v12 = vadd.s32 1, %v1302_v10  ;;  %v1294_v14 = vadd.s32 4294967169, %v32_v11 }
   0xa   :  { %vm250_vm1 = vcmp.gt.s32.totalorder %v249_v12, 0  ;;  %v38_v17 = vadd.s32 1, %v1294_v14 }
   0xb   :  { %v251_v16 = vsel %vm250_vm1, %v249_v12, 0 }
   0xc   :  { %v252_v18 = vshrl.u32 %v251_v16, 5  ;;  %v253_v19 = vand.u32 31, %v251_v16 }
   0xd   :  { %12 = vsyncpa [#allocation3], 0  ;;  %v1745_v20 = vshll.u32 %v247_v13, 8  ;;  %v36_v21 = vor.u32 8388608, %v1743_v15  ;;  %vm39_vm2 = vcmp.gt.s32.totalorder %v38_v17, 0  ;;  %vm241_vm15 = vcmp.lt.s32.totalorder %v1714_v0, 0 }
   0xe   :  { %v254_v22 = vsub.s32 32, %v253_v19  ;;  %v1661_v23 = vmov 683565275   ;;  %v1662_v25 = vmov 2475754826   ;;  %vm271_vm3 = vcmp.lt.s32.totalorder %v252_v18, 1 }
   0xf   :  { %v256_v24 = vshll.u32 %v1661_v23, %v253_v19  ;;  %v259_v26 = vshll.u32 %v1662_v25, %v253_v19  ;;  %v1663_v27 = vmov 2131351028   ;;  %v1664_v29 = vmov 2102212464  }
  0x10   :  { %v262_v28 = vshll.u32 %v1663_v27, %v253_v19  ;;  %v265_v30 = vshll.u32 %v1664_v29, %v253_v19  ;;  %v1665_v31 = vmov 920167782   ;;  %vm272_vm4 = vcmp.lt.s32.totalorder %v252_v18, 2 }
  0x11   :  { %v268_v32 = vshll.u32 %v1665_v31, %v253_v19  ;;  %v255_v33 = vshrl.u32 %v1661_v23, %v254_v22  ;;  %v257_v34 = vshrl.u32 %v1662_v25, %v254_v22  ;;  %v260_v35 = vshrl.u32 %v1663_v27, %v254_v22 }
  0x12   :  { %v263_v36 = vshrl.u32 %v1664_v29, %v254_v22  ;;  %v266_v37 = vshrl.u32 %v1665_v31, %v254_v22  ;;  %v1666_v38 = vmov 1326507024   ;;  %vm273_vm5 = vcmp.lt.s32.totalorder %v252_v18, 3 }
  0x13   :  { %v269_v39 = vshrl.u32 %v1666_v38, %v254_v22  ;;  %vm274_vm6 = vcmp.lt.s32.totalorder %v252_v18, 4  ;;  %v258_v40 = vor.u32 %v257_v34, %v256_v24  ;;  %v261_v41 = vor.u32 %v260_v35, %v259_v26 }
  0x14   :  { %v264_v42 = vor.u32 %v263_v36, %v262_v28  ;;  %v40_v43 = vsel %vm39_vm2, %v38_v17, 0  ;;  %v267_v44 = vor.u32 %v266_v37, %v265_v30  ;;  %vm240_vm1 = vcmp.le.f32.partialorder %v239_v2, 0.7853982 }
  0x15   :  { %v270_v45 = vor.u32 %v269_v39, %v268_v32  ;;  %v41_v46 = vshrl.u32 %v40_v43, 5  ;;  %v42_v47 = vand.u32 31, %v40_v43  ;;  %v275_v48 = vsel %vm271_vm3, %v255_v33, %v258_v40 }
  0x16   :  { %v276_v49 = vsel %vm274_vm6, %v264_v42, 2102212464  ;;  %v279_v50 = vsel %vm271_vm3, %v258_v40, %v261_v41  ;;  %v283_v51 = vsel %vm271_vm3, %v261_v41, %v264_v42  ;;  %v280_v53 = vsel %vm274_vm6, %v267_v44, 920167782 }
  0x17   :  { %v277_v52 = vsel %vm273_vm5, %v261_v41, %v276_v49  ;;  %v284_v54 = vsel %vm274_vm6, %v270_v45, 1326507024  ;;  %v43_v55 = vsub.s32 32, %v42_v47  ;;  %v281_v57 = vsel %vm273_vm5, %v264_v42, %v280_v53 }
  0x18   :  { %v278_v56 = vsel %vm272_vm4, %v275_v48, %v277_v52  ;;  %v285_v58 = vsel %vm273_vm5, %v267_v44, %v284_v54  ;;  %v45_v59 = vshll.u32 %v1661_v23, %v42_v47  ;;  %v282_v60 = vsel %vm272_vm4, %v279_v50, %v281_v57 }
  0x19   :  { %v286_v61 = vsel %vm272_vm4, %v283_v51, %v285_v58  ;;  %v294_v62 = vmul.u32 %v1745_v20, %v278_v56  ;;  %v44_v63 = vshrl.u32 %v1661_v23, %v43_v55  ;;  %v46_v10 = vshrl.u32 %v1662_v25, %v43_v55 }
  0x1a   :  { %v1760_v3 = vmul.u32.u64.low %v1745_v20, %v286_v61  ;;  %v1761_v5 = vmul.u32.u64.high %v1745_v20, %v286_v61, %v1760_v3  ;;  %v1764_v7 = vmul.u32.u64.low %v1745_v20, %v282_v60  ;;  %v1765_v9 = vmul.u32.u64.high %v1745_v20, %v282_v60, %v1764_v7 }
  0x1b   :  { %v48_v11 = vshll.u32 %v1662_v25, %v42_v47  ;;  %v49_v12 = vshrl.u32 %v1663_v27, %v43_v55  ;;  %v51_v13 = vshll.u32 %v1663_v27, %v42_v47  ;;  %v52_v14 = vshrl.u32 %v1664_v29, %v43_v55 }
  0x1c   :  { %v54_v16 = vshll.u32 %v1664_v29, %v42_v47  ;;  %v55_v17 = vshrl.u32 %v1665_v31, %v43_v55  ;;  %v57_v18 = vshll.u32 %v1665_v31, %v42_v47  ;;  %v47_v19 = vor.u32 %v46_v10, %v45_v59 }
  0x1d   :  { %v50_v22 = vor.u32 %v49_v12, %v48_v11  ;;  %v58_v24 = vshrl.u32 %v1666_v38, %v43_v55  ;;  %vm60_vm7 = vcmp.lt.s32.totalorder %v41_v46, 1  ;;  %vm296_vm8 = vc.u32 %v1761_v5, %v1764_v7 }
  0x1e   :  { %v297_v23 = vadd.s32 1, %v1765_v9  ;;  %v53_v26 = vor.u32 %v52_v14, %v51_v13  ;;  %v76_v20 = vshll.u32 %v36_v21, 8  ;;  %v56_v28 = vor.u32 %v55_v17, %v54_v16 }
  0x1f   :  { %v59_v25 = vor.u32 %v58_v24, %v57_v18  ;;  %vm61_vm9 = vcmp.lt.s32.totalorder %v41_v46, 2  ;;  %vm62_vm10 = vcmp.lt.s32.totalorder %v41_v46, 3  ;;  %vm63_vm11 = vcmp.lt.s32.totalorder %v41_v46, 4 }
  0x20   :  { %v298_v27 = vsel %vm296_vm8, %v297_v23, %v1765_v9  ;;  %v64_v29 = vsel %vm60_vm7, %v44_v63, %v47_v19  ;;  %v68_v30 = vsel %vm60_vm7, %v47_v19, %v50_v22  ;;  %v65_v32 = vsel %vm63_vm11, %v53_v26, 2102212464 }
  0x21   :  { %v299_v31 = vadd.s32 %v298_v27, %v294_v62  ;;  %v69_v33 = vsel %vm63_vm11, %v56_v28, 920167782  ;;  %v72_v34 = vsel %vm60_vm7, %v50_v22, %v53_v26  ;;  %v66_v35 = vsel %vm62_vm10, %v50_v22, %v65_v32 }
  0x22   :  { %v70_v36 = vsel %vm62_vm10, %v53_v26, %v69_v33  ;;  %v73_v15 = vsel %vm63_vm11, %v59_v25, 1326507024  ;;  %v67_v39 = vsel %vm61_vm9, %v64_v29, %v66_v35  ;;  %v295_v59 = vadd.s32 %v1764_v7, %v1761_v5 }
  0x23   :  { %v300_v21 = vadd.s32 536870912, %v299_v31  ;;  %v71_v37 = vsel %vm61_vm9, %v68_v30, %v70_v36  ;;  %v74_v38 = vsel %vm62_vm10, %v56_v28, %v73_v15  ;;  %v83_v48 = vmul.u32 %v76_v20, %v67_v39 }
  0x24   :  { %v75_v40 = vsel %vm61_vm9, %v72_v34, %v74_v38  ;;  %v1778_v41 = vmul.u32.u64.low %v76_v20, %v71_v37  ;;  %v1779_v42 = vmul.u32.u64.high %v76_v20, %v71_v37, %v1778_v41  ;;  %vm30_vm2 = vcmp.lt.s32.totalorder %v1735_v6, 0 }
  0x25   :  { %v301_v43 = vshrl.u32 %v300_v21, 30  ;;  %v1781_v44 = vmul.u32.u64.low %v76_v20, %v75_v40  ;;  %v1782_v45 = vmul.u32.u64.high %v76_v20, %v75_v40, %v1781_v44  ;;  %vm1796_vm3 = vcmp.le.f32.partialorder %v28_v8, 0.7853982 }
  0x26   :  { %v86_v49 = vadd.s32 1, %v1779_v42  ;;  %vm331_vm10 = vweird.f32 %v1714_v0 }
  0x27   :  { %v302_v47 = vshll.u32 %v301_v43, 30  ;;  %vm85_vm12 = vc.u32 %v1782_v45, %v1778_v41  ;;  %v84_v24 = vadd.s32 %v1778_v41, %v1782_v45  ;;  %v325_v7 = vsub.s32 4, %v301_v43 }
  0x28   :  { %v87_v51 = vsel %vm85_vm12, %v86_v49, %v1779_v42 }
  0x29   :  { %v303_v50 = vsub.s32 %v299_v31, %v302_v47  ;;  %v88_v53 = vadd.s32 %v87_v51, %v83_v48  ;;  %v326_v31 = vsel %vm241_vm15, %v325_v7, %v301_v43 }
  0x2a   :  { %v328_v35 = vsel %vm240_vm1, 0, %v326_v31  ;;  %v450_v31 = vld [vmem:[%s2083_s4 + $0x8] sm:$0xff] }
  0x2b   :  { %v305_v52 = vsub.s32 0, %v303_v50  ;;  %v89_v54 = vadd.s32 536870912, %v88_v53  ;;  %v437_v21 = vadd.s32 3, %v328_v35  ;;  %v332_v40 = vand.u32 3, %v328_v35  ;;  %v455_v35 = vld [vmem:[%s2083_s4 + $0x30] sm:$0xff] }
  0x2d   :  { %v1303_v46 = vmin.u32 %v305_v52, %v303_v50  ;;  %v90_v56 = vshrl.u32 %v89_v54, 30  ;;  %v438_v2 = vand.u32 3, %v437_v21  ;;  %vm333_vm4 = vcmp.lt.s32.totalorder %v332_v40, 2  ;;  %v342_v54 = vld [vmem:[%s2082_s3] sm:$0xff]  ;;  %v458_v21 = vld [vmem:[%s2083_s4 + $0x48] sm:$0xff] }
  0x2e   :  { %vm337_vm5 = vcmp.eq.s32.totalorder %v332_v40, 2  ;;  %vm334_vm7 = vcmp.eq.s32.totalorder %v332_v40, 0  ;;  %v1669_v40 = vmov 0.0  }
  0x2f   :  { %v307_v55 = vclz %v1303_v46  ;;  %v91_v58 = vshll.u32 %v90_v56, 30  ;;  %v114_v39 = vsub.s32 4, %v90_v56  ;;  %vm443_vm6 = vcmp.eq.s32.totalorder %v438_v2, 2 }
  0x30   :  { %vm440_vm8 = vcmp.eq.s32.totalorder %v438_v2, 0  ;;  %vm439_vm9 = vcmp.lt.s32.totalorder %v438_v2, 2 }
  0x31   :  { %v1304_v57 = vadd.s32 4294967294, %v307_v55  ;;  %v92_v61 = vsub.s32 %v88_v53, %v91_v58  ;;  %v115_v44 = vsel %vm30_vm2, %v114_v39, %v90_v56  ;;  %v1667_v39 = vmov 0.0|0.0  }
  0x33   :  { %vm1305_vm13 = vcmp.lt.s32.totalorder %v1304_v57, 0  ;;  %v94_v9 = vsub.s32 0, %v92_v61 }
  0x34   :  { %v310_v60 = vsel %vm1305_vm13, 0, %v1304_v57 }
  0x35   :  { %v311_v62 = vsub.s32 32, %v310_v60  ;;  %v312_v63 = vshll.u32 %v303_v50, %v310_v60  ;;  %v315_v3 = vsub.s32 4294967266, %v310_v60  ;;  %v1295_v12 = vmin.u32 %v94_v9, %v92_v61  ;;  %v463_v9 = vld [vmem:[%s2084_s5 + $0x10] sm:$0xff] }
  0x36   :  { %v117_v50 = vsel %vm1796_vm3, 0, %v115_v44 }
  0x37   :  { %v313_v10 = vshrl.u32 %v295_v59, %v311_v62  ;;  %v316_v11 = vadd.s32 127, %v315_v3  ;;  %v96_v16 = vclz %v1295_v12  ;;  %v226_v53 = vadd.s32 3, %v117_v50  ;;  %v464_v12 = vld [vmem:[%s2084_s5 + $0x18] sm:$0xff] }
  0x38   :  { %v121_v62 = vand.u32 3, %v117_v50 }
  0x39   :  { %v314_v13 = vor.u32 %v313_v10, %v312_v63  ;;  %v317_v14 = vshll.u32 %v316_v11, 23  ;;  %v1296_v19 = vadd.s32 4294967294, %v96_v16  ;;  %v1816_v63 = vld [vmem:[%s2084_s5 + $0x58] sm:$0xff]  ;;  %v465_v16 = vld [vmem:[%s2084_s5 + $0x20] sm:$0xff] }
  0x3a   :  { %vm126_vm12 = vcmp.eq.s32.totalorder %v121_v62, 2 }
  0x3b   :  { %v318_v17 = vor.u32 4788187, %v317_v14  ;;  %v321_v18 = vcvt.s32.f32 %v314_v13  ;;  %vm1297_vm14 = vcmp.lt.s32.totalorder %v1296_v19, 0 }
  0x3c   :  { %v99_v23 = vsel %vm1297_vm14, 0, %v1296_v19  ;;  %vm123_vm14 = vcmp.eq.s32.totalorder %v121_v62, 0 }
  0x3d   :  { %v319_v22 = vand.u32 2147483647, %v318_v17  ;;  %v100_v26 = vsub.s32 32, %v99_v23  ;;  %v101_v20 = vshll.u32 %v92_v61, %v99_v23  ;;  %v104_v28 = vsub.s32 4294967266, %v99_v23 }
  0x3e   :  { %v227_v61 = vand.u32 3, %v226_v53 }
  0x3f   :  { %v322_v5 = vmul.f32 %v321_v18, %v319_v22  ;;  %v102_v27 = vshrl.u32 %v84_v24, %v100_v26  ;;  %v105_v29 = vadd.s32 127, %v104_v28  ;;  %v467_v28 = vld [vmem:[%s2084_s5 + $0x30] sm:$0xff] }
  0x40   :  { %vm232_vm11 = vcmp.eq.s32.totalorder %v227_v61, 2  ;;  %vm229_vm13 = vcmp.eq.s32.totalorder %v227_v61, 0 }
  0x41   :  { %v323_v25 = vxor.u32 2147483648, %v322_v5  ;;  %v103_v33 = vor.u32 %v102_v27, %v101_v20  ;;  %v106_v34 = vshll.u32 %v105_v29, 23  ;;  %v469_v27 = vld [vmem:[%s2084_s5 + $0x40] sm:$0xff]  ;;  %v470_v29 = vld [vmem:[%s2084_s5 + $0x48] sm:$0xff] }
  0x43   :  { %v324_v30 = vsel %vm241_vm15, %v323_v25, %v322_v5  ;;  %v107_v36 = vor.u32 4788187, %v106_v34  ;;  %v110_v15 = vcvt.s32.f32 %v103_v33  ;;  %vm228_vm15 = vcmp.lt.s32.totalorder %v227_v61, 2  ;;  %v468_v25 = vld [vmem:[%s2084_s5 + $0x38] sm:$0xff]  ;;  %v453_v34 = vld [vmem:[%s2083_s4 + $0x20] sm:$0xff] }
  0x44   :  { %v327_v32 = vsel %vm240_vm1, %v1714_v0, %v324_v30  ;;  %v462_v0 = vld [vmem:[%s2084_s5 + $0x8] sm:$0xff]  ;;  %vm122_vm1 = vcmp.lt.s32.totalorder %v121_v62, 2  ;;  %v449_v30 = vld [vmem:[%s2083_s4] sm:$0xff]  ;;  %v452_v33 = vld [vmem:[%s2083_s4 + $0x18] sm:$0xff] }
  0x45   :  { %1605 = vcosq.f32 %v327_v32  ;;  %v108_v37 = vand.u32 2147483647, %v107_v36  ;;  %v456_v36 = vld [vmem:[%s2083_s4 + $0x38] sm:$0xff] }
  0x46   :  { %1607 = vsinq.f32 %v327_v32  ;;  %v451_v32 = vld [vmem:[%s2083_s4 + $0x10] sm:$0xff] }
  0x47   :  { %v111_v38 = vmul.f32 %v110_v15, %v108_v37  ;;  %v457_v15 = vld [vmem:[%s2083_s4 + $0x40] sm:$0xff]  ;;  %v459_v37 = vld [vmem:[%s2083_s4 + $0x50] sm:$0xff] }
  0x49   :  { %v112_v42 = vxor.u32 2147483648, %v111_v38 }
  0x4b   :  { %v113_v43 = vsel %vm30_vm2, %v112_v42, %v111_v38  ;;  %vm120_vm2 = vweird.f32 %v1735_v6  ;;  %v460_v38 = vld [vmem:[%s2083_s4 + $0x58] sm:$0xff] }
  0x4c   :  { %v116_v47 = vsel %vm1796_vm3, %v1735_v6, %v113_v43  ;;  %v466_v6 = vld [vmem:[%s2084_s5 + $0x28] sm:$0xff]  ;;  %vm1668_vm3 = vmmov 0  }
  0x4d   :  { %1609 = vcosq.f32 %v116_v47 }
  0x4e   :  { %1611 = vsinq.f32 %v116_v47 }
  0x4f   :  { %v1606_v45 = vpop.eup %1605 }
  0x50   :  { %v1608_v48 = vpop.eup %1607  ;;  %v338_v49 = vxor.u32 2147483648, %v1606_v45 }
  0x51   :  { %v335_v8 = vxor.u32 2147483648, %v1608_v48 }
  0x52   :  { %v339_v51 = vsel %vm337_vm5, %v338_v49, %v1608_v48  ;;  %v445_v52 = vsel %vm443_vm6, %v338_v49, %v1608_v48 }
  0x53   :  { %v336_v46 = vsel %vm334_vm7, %v1606_v45, %v335_v8  ;;  %v442_v55 = vsel %vm440_vm8, %v1606_v45, %v335_v8 }
  0x54   :  { %v340_v56 = vsel %vm333_vm4, %v336_v46, %v339_v51  ;;  %v446_v57 = vsel %vm439_vm9, %v442_v55, %v445_v52 }
  0x55   :  { %v341_v58 = vsel %vm331_vm10, nan, %v340_v56  ;;  %v447_v59 = vsel %vm331_vm10, nan, %v446_v57 }
  0x56   :  { %v343_v60 = vmul.f32 %v342_v54, %v341_v58  ;;  %v448_v3 = vmul.f32 %v447_v59, %v342_v54 }
  0x57   :  { %v1610_v10 = vpop.eup %1609 }
  0x58   :  { %1428 = vmatprep.subr.mxu0 %v343_v60  ;;  %1559 = vmatprep.subr.mxu1 %v343_v60  ;;  %v1612_v11 = vpop.eup %1611  ;;  %v127_v13 = vxor.u32 2147483648, %v1610_v10 }
  0x59   :  { %1429 = vmatpush3.msra.mxu0 %v343_v60  ;;  %1560 = vmatpush3.msra.mxu1 %v343_v60  ;;  %v124_v14 = vxor.u32 2147483648, %v1612_v11 }
  0x5a   :  { %1431 = vmatmul.mubr.msk.f32.vlgmr.msra.gmra.mrb[0].mxu0 %vm473_vm0, %v462_v0  ;;  %1446 = vmatmul.mubr.msk.f32.vlgmr.msra.gmra.mrb[0].mxu1 %vm473_vm0, %v1816_v63  ;;  %v234_v17 = vsel %vm232_vm11, %v127_v13, %v1612_v11  ;;  %v128_v18 = vsel %vm126_vm12, %v127_v13, %v1612_v11 }
  0x5b   :  { %1468 = vmatprep.subr.mxu1 %v448_v3  ;;  %1433 = vmatprep.mubr.msk.f32.mxu0 %vm473_vm0, %v463_v9  ;;  %v231_v19 = vsel %vm229_vm13, %v1610_v10, %v124_v14  ;;  %v125_v22 = vsel %vm123_vm14, %v1610_v10, %v124_v14 }
  0x5c   :  { %1469 = vmatpush3.msra.mxu1 %v448_v3  ;;  %1470 = vmatprep.mubr.msk.f32.mxu1 %vm473_vm0, %v1719_v1  ;;  %v131_v1 = vld [vmem:[%s2081_s2] sm:$0xff]  ;;  %v235_v24 = vsel %vm228_vm15, %v231_v19, %v234_v17  ;;  %v129_v5 = vsel %vm122_vm1, %v125_v22, %v128_v18 }
  0x5d   :  { %v236_v7 = vsel %vm120_vm2, nan, %v235_v24  ;;  %v130_v23 = vsel %vm120_vm2, nan, %v129_v5 }
  0x5e   :  { %1434 = vmatmul.mubr.msk.f32.gmra.mrb[2].mxu0 %vm473_vm0, %v464_v12  ;;  %1471 = vmatmul.mubr.msk.f32.vlgmr.msra.gmra.mrb[2].mxu1 %vm473_vm0, %v462_v0  ;;  %v237_v26 = vmul.f32 %v236_v7, %v131_v1  ;;  %v132_v20 = vmul.f32 %v131_v1, %v130_v23 }
  0x5f   :  { %1436 = vmatprep.mubr.msk.f32.mxu0 %vm473_vm0, %v465_v16  ;;  %1473 = vmatprep.mubr.msk.f32.mxu1 %vm473_vm0, %v463_v9 }
  0x60   :  { %1488 = vmatprep.subr.mxu1 %v237_v26  ;;  %1448 = vmatprep.subr.mxu0 %v132_v20 }
  0x61   :  { %1489 = vmatpush3.msra.mxu1 %v237_v26  ;;  %1449 = vmatpush3.msra.mxu0 %v132_v20 }
  0x62   :  { %1437 = vmatmul.mubr.msk.f32.gmra.mrb[4].mxu0 %vm473_vm0, %v466_v6  ;;  %1474 = vmatmul.mubr.msk.f32.gmra.mrb[4].mxu1 %vm473_vm0, %v464_v12 }
  0x63   :  { %1439 = vmatprep.mubr.msk.f32.mxu0 %vm473_vm0, %v467_v28  ;;  %1476 = vmatprep.mubr.msk.f32.mxu1 %vm473_vm0, %v465_v16 }
  0x64   :  { %1541 = vmatprep.subr.bf16.mxu0 %v1667_v39 }
  0x66   :  { %1440 = vmatmul.mubr.msk.f32.gmra.mrb[6].mxu0 %vm473_vm0, %v468_v25  ;;  %1477 = vmatmul.mubr.msk.f32.gmra.mrb[6].mxu1 %vm473_vm0, %v466_v6 }
  0x67   :  { %1442 = vmatprep.mubr.msk.f32.mxu0 %vm473_vm0, %v469_v27  ;;  %1479 = vmatprep.mubr.msk.f32.mxu1 %vm473_vm0, %v467_v28 }
  0x6a   :  { %1443 = vmatmul.mubr.msk.f32.gmra.mrb[8].mxu0 %vm473_vm0, %v470_v29  ;;  %1480 = vmatmul.mubr.msk.f32.gmra.mrb[8].mxu1 %vm473_vm0, %v468_v25 }
  0x6b   :  { %1450 = vmatprep.mubr.msk.f32.mxu0 %vm473_vm0, %v449_v30  ;;  %1482 = vmatprep.mubr.msk.f32.mxu1 %vm473_vm0, %v469_v27 }
  0x6e   :  { %1451 = vmatmul.mubr.msk.f32.vlgmr.msra.gmra.mrb[0].mxu0 %vm473_vm0, %v450_v31  ;;  %1483 = vmatmul.mubr.msk.f32.gmra.mrb[10].mxu1 %vm473_vm0, %v470_v29 }
  0x6f   :  { %1453 = vmatprep.mubr.msk.f32.mxu0 %vm473_vm0, %v451_v32  ;;  %1485 = vmatprep.mubr.msk.f32.mxu1 %vm473_vm0, %v1728_v4  ;;  %v454_v4 = vld [vmem:[%s2083_s4 + $0x28] sm:$0xff] }
  0x72   :  { %1454 = vmatmul.mubr.msk.f32.gmra.mrb[2].mxu0 %vm473_vm0, %v452_v33  ;;  %1486 = vmatmul.mubr.msk.f32.gmra.mrb[12].mxu1 %vm473_vm0, %v1816_v63 }
  0x73   :  { %1456 = vmatprep.mubr.msk.f32.mxu0 %vm473_vm0, %v453_v34  ;;  %1490 = vmatprep.mubr.msk.f32.mxu1 %vm473_vm0, %v449_v30 }
  0x76   :  { %1457 = vmatmul.mubr.msk.f32.gmra.mrb[4].mxu0 %vm473_vm0, %v454_v4  ;;  %1491 = vmatmul.mubr.msk.f32.vlgmr.msra.gmra.mrb[2].mxu1 %vm473_vm0, %v450_v31 }
  0x77   :  { %1459 = vmatprep.mubr.msk.f32.mxu0 %vm473_vm0, %v455_v35  ;;  %1493 = vmatprep.mubr.msk.f32.mxu1 %vm473_vm0, %v451_v32 }
  0x7a   :  { %1460 = vmatmul.mubr.msk.f32.gmra.mrb[6].mxu0 %vm473_vm0, %v456_v36  ;;  %1494 = vmatmul.mubr.msk.f32.gmra.mrb[4].mxu1 %vm473_vm0, %v452_v33 }
  0x7b   :  { %1462 = vmatprep.mubr.msk.f32.mxu0 %vm473_vm0, %v457_v15  ;;  %1496 = vmatprep.mubr.msk.f32.mxu1 %vm473_vm0, %v453_v34 }
  0x7e   :  { %1463 = vmatmul.mubr.msk.f32.gmra.mrb[8].mxu0 %vm473_vm0, %v458_v21  ;;  %1497 = vmatmul.mubr.msk.f32.gmra.mrb[6].mxu1 %vm473_vm0, %v454_v4 }
  0x7f   :  { %1465 = vmatprep.mubr.msk.f32.mxu0 %vm473_vm0, %v459_v37  ;;  %1499 = vmatprep.mubr.msk.f32.mxu1 %vm473_vm0, %v455_v35 }
  0x82   :  { %1466 = vmatmul.mubr.msk.f32.gmra.mrb[10].mxu0 %vm473_vm0, %v460_v38  ;;  %1500 = vmatmul.mubr.msk.f32.gmra.mrb[8].mxu1 %vm473_vm0, %v456_v36 }
  0x83   :  { %1502 = vmatprep.mubr.msk.f32.mxu1 %vm473_vm0, %v457_v15  ;;  %1532 = vmatprep.mubr.msk.f32.mxu0 %vm1668_vm3, %v1669_v40 }
  0x86   :  { %1503 = vmatmul.mubr.msk.f32.gmra.mrb[10].mxu1 %vm473_vm0, %v458_v21 }
  0x87   :  { %1505 = vmatprep.mubr.msk.f32.mxu1 %vm473_vm0, %v459_v37 }
  0x8a   :  { %1506 = vmatmul.mubr.msk.f32.gmra.mrb[12].mxu1 %vm473_vm0, %v460_v38 }
 0x12d   :  { %v1447_v2 = vpop.f32.mrb[0].mxu1 }
 0x12e   :  { %v626_v41 = vpop.f32.mrb[1].mxu1 }
 0x141   :  { %v1452_v42 = vpop.f32.mrb[0].mxu0 }
 0x142   :  { %v737_v43 = vpop.f32.mrb[1].mxu0  ;;  %v1047_v49 = vmul.f32 %v1452_v42, %v1452_v42 }
 0x143   :  { %v1046_v52 = vmul.f32 %v737_v43, %v737_v43 }
 0x145   :  { %v1455_v44 = vpop.f32.mrb[2].mxu0 }
 0x146   :  { %v747_v45 = vpop.f32.mrb[3].mxu0  ;;  %v1049_v57 = vmul.f32 %v1455_v44, %v1455_v44 }
 0x147   :  { %v1048_v61 = vmul.f32 %v747_v45, %v747_v45 }
 0x149   :  { %v1458_v47 = vpop.f32.mrb[4].mxu0  ;;  %v1492_v48 = vpop.f32.mrb[2].mxu1 }
 0x14a   :  { %v1059_v8 = vmul.f32 %v1492_v48, %v1492_v48  ;;  %v757_v50 = vpop.f32.mrb[5].mxu0  ;;  %v987_v51 = vpop.f32.mrb[3].mxu1  ;;  %v1051_v10 = vmul.f32 %v1458_v47, %v1458_v47 }
 0x14b   :  { %v1058_v53 = vmul.f32 %v987_v51, %v987_v51  ;;  %v1050_v14 = vmul.f32 %v757_v50, %v757_v50 }
 0x14c   :  { %v1937_v46 = vadd.f32 %v1059_v8, %v1047_v49 }
 0x14d   :  { %v1939_v54 = vadd.f32 %v1058_v53, %v1046_v52  ;;  %v1461_v55 = vpop.f32.mrb[6].mxu0  ;;  %v1495_v56 = vpop.f32.mrb[4].mxu1 }
 0x14e   :  { %1613 = vrsqrt.f32 %v1937_v46  ;;  %v1061_v58 = vmul.f32 %v1495_v56, %v1495_v56  ;;  %v767_v59 = vpop.f32.mrb[7].mxu0  ;;  %v997_v60 = vpop.f32.mrb[5].mxu1  ;;  %v1053_v17 = vmul.f32 %v1461_v55, %v1461_v55  ;;  %vm1091_vm0 = vcmp.eq.f32.partialorder %v1937_v46, inf }
 0x14f   :  { %1615 = vrsqrt.f32 %v1939_v54  ;;  %v1060_v62 = vmul.f32 %v997_v60, %v997_v60  ;;  %v1052_v18 = vmul.f32 %v767_v59, %v767_v59  ;;  %vm1084_vm4 = vcmp.eq.f32.partialorder %v1939_v54, inf }
 0x150   :  { %v1943_v0 = vadd.f32 %v1061_v58, %v1049_v57  ;;  %vm1086_vm5 = vcmp.eq.f32.partialorder %v1939_v54, 0.0  ;;  %v1087_v5 = vand.u32 2147483648, %v1939_v54  ;;  %vm1093_vm6 = vcmp.eq.f32.partialorder %v1937_v46, 0.0 }
 0x151   :  { %v1945_v63 = vadd.f32 %v1060_v62, %v1048_v61  ;;  %v1464_v3 = vpop.f32.mrb[8].mxu0  ;;  %v1498_v9 = vpop.f32.mrb[6].mxu1  ;;  %v1094_v25 = vand.u32 2147483648, %v1937_v46 }
 0x152   :  { %1617 = vrsqrt.f32 %v1943_v0  ;;  %v1063_v11 = vmul.f32 %v1498_v9, %v1498_v9  ;;  %v777_v12 = vpop.f32.mrb[9].mxu0  ;;  %v1007_v13 = vpop.f32.mrb[7].mxu1  ;;  %v1055_v29 = vmul.f32 %v1464_v3, %v1464_v3  ;;  %vm1105_vm7 = vcmp.eq.f32.partialorder %v1943_v0, inf }
 0x153   :  { %1619 = vrsqrt.f32 %v1945_v63  ;;  %v1062_v16 = vmul.f32 %v1007_v13, %v1007_v13  ;;  %v1054_v30 = vmul.f32 %v777_v12, %v777_v12  ;;  %vm1098_vm8 = vcmp.eq.f32.partialorder %v1945_v63, inf }
 0x154   :  { %v1949_v1 = vadd.f32 %v1063_v11, %v1051_v10  ;;  %vm1100_vm9 = vcmp.eq.f32.partialorder %v1945_v63, 0.0  ;;  %v1101_v21 = vand.u32 2147483648, %v1945_v63  ;;  %vm1107_vm10 = vcmp.eq.f32.partialorder %v1943_v0, 0.0 }
 0x155   :  { %v1952_v19 = vadd.f32 %v1062_v16, %v1050_v14  ;;  %v1467_v22 = vpop.f32.mrb[10].mxu0  ;;  %v1501_v24 = vpop.f32.mrb[8].mxu1  ;;  %v1108_v44 = vand.u32 2147483648, %v1943_v0 }
 0x156   :  { %1621 = vrsqrt.f32 %v1949_v1  ;;  %v793_v6 = vadd.f32 %v1467_v22, %v1447_v2  ;;  %v1065_v7 = vmul.f32 %v1501_v24, %v1501_v24  ;;  %v787_v23 = vpop.f32.mrb[11].mxu0  ;;  %v1017_v26 = vpop.f32.mrb[9].mxu1  ;;  %vm1119_vm11 = vcmp.eq.f32.partialorder %v1949_v1, inf }
 0x157   :  { %1623 = vrsqrt.f32 %v1952_v19  ;;  %v788_v20 = vadd.f32 %v787_v23, %v626_v41  ;;  %v1064_v28 = vmul.f32 %v1017_v26, %v1017_v26  ;;  %vm1112_vm12 = vcmp.eq.f32.partialorder %v1952_v19, inf }
 0x158   :  { %v1614_v27 = vpop.eup %1613  ;;  %v1961_v31 = vadd.f32 %v1065_v7, %v1053_v17  ;;  %v1057_v47 = vmul.f32 %v793_v6, %v793_v6  ;;  %v1122_v11 = vand.u32 2147483648, %v1949_v1  ;;  %v1115_v12 = vand.u32 2147483648, %v1952_v19 }
 0x159   :  { %v1616_v32 = vpop.eup %1615  ;;  %v1964_v33 = vadd.f32 %v1064_v28, %v1052_v18  ;;  %v1504_v34 = vpop.f32.mrb[10].mxu1  ;;  %v1090_v4 = vmul.f32 %v1614_v27, %v1937_v46  ;;  %v1056_v55 = vmul.f32 %v788_v20, %v788_v20  ;;  %vm1121_vm13 = vcmp.eq.f32.partialorder %v1949_v1, 0.0 }
 0x15a   :  { %1625 = vrsqrt.f32 %v1961_v31  ;;  %v1067_v35 = vmul.f32 %v1504_v34, %v1504_v34  ;;  %v1027_v36 = vpop.f32.mrb[11].mxu1  ;;  %v1083_v15 = vmul.f32 %v1616_v32, %v1939_v54  ;;  %vm1114_vm14 = vcmp.eq.f32.partialorder %v1952_v19, 0.0 }
 0x15b   :  { %1627 = vrsqrt.f32 %v1964_v33  ;;  %v1066_v37 = vmul.f32 %v1027_v36, %v1027_v36  ;;  %v1092_v38 = vsel %vm1091_vm0, %v1937_v46, %v1090_v4  ;;  %vm1133_vm15 = vcmp.eq.f32.partialorder %v1961_v31, inf }
 0x15c   :  { %v1618_v2 = vpop.eup %1617  ;;  %v1977_v41 = vadd.f32 %v1067_v35, %v1055_v29  ;;  %v1085_v42 = vsel %vm1084_vm4, %v1939_v54, %v1083_v15  ;;  %v1095_v43 = vsel %vm1093_vm6, %v1094_v25, %v1092_v38  ;;  %vm1126_vm1 = vcmp.eq.f32.partialorder %v1964_v33, inf }
 0x15d   :  { %v1620_v45 = vpop.eup %1619  ;;  %v1985_v48 = vadd.f32 %v1066_v37, %v1054_v30  ;;  %v1507_v49 = vpop.f32.mrb[12].mxu1  ;;  %v1088_v8 = vsel %vm1086_vm5, %v1087_v5, %v1085_v42  ;;  %v1104_v50 = vmul.f32 %v1618_v2, %v1943_v0  ;;  %v1129_v6 = vand.u32 2147483648, %v1964_v33 }
 0x15e   :  { %1629 = vrsqrt.f32 %v1977_v41  ;;  %v1069_v51 = vmul.f32 %v1507_v49, %v1507_v49  ;;  %v1037_v52 = vpop.f32.mrb[13].mxu1  ;;  %v1542_v53 = vpack.c.bf16 %v1095_v43, %v1088_v8  ;;  %v1097_v46 = vmul.f32 %v1620_v45, %v1945_v63 }
 0x15f   :  { %1631 = vrsqrt.f32 %v1985_v48  ;;  %v1068_v56 = vmul.f32 %v1037_v52, %v1037_v52  ;;  %v1106_v57 = vsel %vm1105_vm7, %v1943_v0, %v1104_v50  ;;  %vm1135_vm2 = vcmp.eq.f32.partialorder %v1961_v31, 0.0 }
 0x160   :  { %v1622_v58 = vpop.eup %1621  ;;  %v1996_v54 = vadd.f32 %v1069_v51, %v1057_v47  ;;  %1543 = vmatpush3.bf16.msra.mxu0 %v1542_v53  ;;  %v1099_v59 = vsel %vm1098_vm8, %v1945_v63, %v1097_v46  ;;  %v1109_v60 = vsel %vm1107_vm10, %v1108_v44, %v1106_v57  ;;  %vm1128_vm0 = vcmp.eq.f32.partialorder %v1964_v33, 0.0  ;;  %v1166_v47 = vld [vmem:[%s2085_s6] sm:$0xff] }
 0x161   :  { %v1624_v61 = vpop.eup %1623  ;;  %v2004_v62 = vadd.f32 %v1068_v56, %v1056_v55  ;;  %1544 = vmatprep.subr.bf16.mxu0 %v1667_v39  ;;  %v1102_v3 = vsel %vm1100_vm9, %v1101_v21, %v1099_v59  ;;  %v1118_v9 = vmul.f32 %v1622_v58, %v1949_v1  ;;  %vm1147_vm4 = vcmp.eq.f32.partialorder %v1977_v41, inf }
 0x162   :  { %1633 = vrsqrt.f32 %v1996_v54  ;;  %v1545_v10 = vpack.c.bf16 %v1109_v60, %v1102_v3  ;;  %v1111_v0 = vmul.f32 %v1624_v61, %v1952_v19  ;;  %v1150_v30 = vand.u32 2147483648, %v1977_v41 }
 0x163   :  { %1635 = vrsqrt.f32 %v2004_v62  ;;  %v1120_v13 = vsel %vm1119_vm11, %v1949_v1, %v1118_v9  ;;  %v1136_v1 = vand.u32 2147483648, %v1961_v31  ;;  %vm1140_vm5 = vcmp.eq.f32.partialorder %v1985_v48, inf }
 0x164   :  { %v1626_v63 = vpop.eup %1625  ;;  %1546 = vmatpush3.bf16.msra.mxu0 %v1545_v10  ;;  %v1113_v14 = vsel %vm1112_vm12, %v1952_v19, %v1111_v0  ;;  %v1123_v16 = vsel %vm1121_vm13, %v1122_v11, %v1120_v13  ;;  %vm1149_vm6 = vcmp.eq.f32.partialorder %v1977_v41, 0.0  ;;  %vm1142_vm7 = vcmp.eq.f32.partialorder %v1985_v48, 0.0 }
 0x165   :  { %v1628_v17 = vpop.eup %1627  ;;  %1547 = vmatprep.subr.bf16.mxu0 %v1667_v39  ;;  %v1116_v18 = vsel %vm1114_vm14, %v1115_v12, %v1113_v14  ;;  %v1132_v22 = vmul.f32 %v1626_v63, %v1961_v31  ;;  %vm1161_vm8 = vcmp.eq.f32.partialorder %v1996_v54, inf  ;;  %v1164_v38 = vand.u32 2147483648, %v1996_v54 }
 0x166   :  { %v1548_v24 = vpack.c.bf16 %v1123_v16, %v1116_v18  ;;  %v1125_v5 = vmul.f32 %v1628_v17, %v1964_v33  ;;  %vm1154_vm9 = vcmp.eq.f32.partialorder %v2004_v62, inf  ;;  %v1157_v2 = vand.u32 2147483648, %v2004_v62 }
 0x167   :  { %v1134_v19 = vsel %vm1133_vm15, %v1961_v31, %v1132_v22  ;;  %v1143_v31 = vand.u32 2147483648, %v1985_v48  ;;  %vm1163_vm10 = vcmp.eq.f32.partialorder %v1996_v54, 0.0  ;;  %vm1156_vm11 = vcmp.eq.f32.partialorder %v2004_v62, 0.0 }
 0x168   :  { %v1630_v7 = vpop.eup %1629  ;;  %1549 = vmatpush3.bf16.msra.mxu0 %v1548_v24  ;;  %v1127_v23 = vsel %vm1126_vm1, %v1964_v33, %v1125_v5  ;;  %v1137_v26 = vsel %vm1135_vm2, %v1136_v1, %v1134_v19  ;;  %vm1169_vm12 = vcmask 785408   ;;  %vm1267_vm13 = vcmask 1040384  }
 0x169   :  { %v1632_v20 = vpop.eup %1631  ;;  %1550 = vmatprep.subr.bf16.mxu0 %v1667_v39  ;;  %v1130_v28 = vsel %vm1128_vm0, %v1129_v6, %v1127_v23  ;;  %v1146_v25 = vmul.f32 %v1630_v7, %v1977_v41 }
 0x16a   :  { %v1551_v27 = vpack.c.bf16 %v1137_v26, %v1130_v28  ;;  %v1139_v29 = vmul.f32 %v1632_v20, %v1985_v48 }
 0x16b   :  { %v1148_v32 = vsel %vm1147_vm4, %v1977_v41, %v1146_v25 }
 0x16c   :  { %v1634_v33 = vpop.eup %1633  ;;  %1552 = vmatpush3.bf16.msra.mxu0 %v1551_v27  ;;  %v1141_v34 = vsel %vm1140_vm5, %v1985_v48, %v1139_v29  ;;  %v1151_v4 = vsel %vm1149_vm6, %v1150_v30, %v1148_v32  ;;  %v1167_v48 = vld [vmem:[%s2085_s6 + $0x8] sm:$0xff] }
 0x16d   :  { %v1636_v35 = vpop.eup %1635  ;;  %1553 = vmatprep.subr.bf16.mxu0 %v1667_v39  ;;  %v1144_v36 = vsel %vm1142_vm7, %v1143_v31, %v1141_v34  ;;  %v1160_v15 = vmul.f32 %v1634_v33, %v1996_v54 }
 0x16e   :  { %v1554_v21 = vpack.c.bf16 %v1151_v4, %v1144_v36  ;;  %v1153_v37 = vmul.f32 %v1636_v35, %v2004_v62 }
 0x16f   :  { %v1162_v41 = vsel %vm1161_vm8, %v1996_v54, %v1160_v15 }
 0x170   :  { %1555 = vmatpush3.bf16.msra.mxu0 %v1554_v21  ;;  %v1155_v42 = vsel %vm1154_vm9, %v2004_v62, %v1153_v37  ;;  %v1165_v43 = vsel %vm1163_vm10, %v1164_v38, %v1162_v41 }
 0x171   :  { %1556 = vmatprep.subr.bf16.mxu0 %v1667_v39  ;;  %v1158_v44 = vsel %vm1156_vm11, %v1157_v2, %v1155_v42  ;;  %v1168_v39 = vld [vmem:[%s2085_s6 + $0x10] sm:$0xff]  ;;  %s1670_s6 = smov [#allocation2]  }
 0x172   :  { %v1557_v45 = vpack.c.bf16 %v1165_v43, %v1158_v44  ;;  %s1286_s1 = sshll.u32 %s1670_s6, 4  ;;  %s1287_s1 = int_to_ptr.vmem [resolvable:$true] %s1286_s1 }
 0x173   :  { %s1637_s0 = scalar_lea.vmem %s1287_s1, 128  ;;  %p1642_p1 = scmp.lt.s32.totalorder %s1287_s1, %s1287_s1 }
 0x174   :  { %1558 = vmatpush3.bf16.msra.mxu0 %v1557_v45  ;;  %p1638_p0 = scmp.ne.s32.totalorder %s1287_s1, %s1637_s0  ;;  %p1643_p2 = scmp.lt.s32.totalorder %s1637_s0, %s1637_s0 }
 0x176   :  { %p1644_p3 = por %p1643_p2, %p1642_p1 }
 0x177   :  { %1533 = vmatmul.mubr.msk.f32.vlgmr.msra.gmra.mrb[12].mxu0 %vm1169_vm12, %v1166_v47 }
 0x178   :  { %1535 = vmatprep.mubr.msk.f32.mxu0 %vm1668_vm3, %v1669_v40  ;;  %p1645_p4 = pnand %p1644_p3, %p1638_p0 }
 0x17b   :  { %1536 = vmatmul.mubr.msk.f32.gmra.mrb[14].mxu0 %vm1169_vm12, %v1167_v48 }
 0x17c   :  { %1538 = vmatprep.mubr.msk.f32.mxu0 %vm1668_vm3, %v1669_v40 }
 0x17f   :  { %1539 = vmatmul.mubr.msk.f32.gmra.mrb[16].mxu0 %vm1169_vm12, %v1168_v39 }
 0x24a   :  { %v1245_v49 = vpop.f32.mrb[12].mxu0 }
 0x24b   :  { %v1534_v8 = vpop.f32.mrb[13].mxu0 }
 0x24e   :  { %v1250_v50 = vpop.f32.mrb[14].mxu0 }
 0x24f   :  { %v1259_v51 = vmin.f32 %v1245_v49, %v1250_v50  ;;  %v1537_v52 = vpop.f32.mrb[15].mxu0 }
 0x252   :  { %v1255_v53 = vpop.f32.mrb[16].mxu0 }
 0x253   :  { %v1260_v46 = vmin.f32 %v1259_v51, %v1255_v53  ;;  %v1540_v55 = vpop.f32.mrb[17].mxu0 }
 0x255   :  { %v1261_v56 = vrot.slane %v1260_v46, 4 }
 0x257   :  { %v1262_v57 = vmin.f32 %v1260_v46, %v1261_v56 }
 0x259   :  { %v1263_v58 = vrot.slane %v1262_v57, 2 }
 0x25b   :  { %v1264_v54 = vmin.f32 %v1262_v57, %v1263_v58 }
 0x25d   :  { %v1265_v59 = vrot.slane %v1264_v54, 1 }
 0x25f   :  { %v1266_v40 = vmin.f32 %v1264_v54, %v1265_v59 }
 0x261   :  { %v1268_v60 = vsel %vm1267_vm13, %v1266_v40, 0.0 }
 0x262   :  { %1269 = vadd.xlane.f32.xlu0 %v1268_v60 }
 0x2ef   :  { %v1270_v61 = vpop.xlane.xlu0 %1269 }
 0x2f0   :  { %v1271_v62 = vrot.slane %v1270_v61, 4 }
 0x2f2   :  { %v1272_v3 = vadd.f32 %v1271_v62, %v1270_v61 }
 0x2f4   :  { %v1273_v9 = vrot.slane %v1272_v3, 2 }
 0x2f6   :  { %v1274_v10 = vadd.f32 %v1273_v9, %v1272_v3 }
 0x2f8   :  { %v1275_v0 = vrot.slane %v1274_v10, 1 }
 0x2fa   :  { %v1276_v11 = vadd.f32 %v1275_v0, %v1274_v10 }
 0x2fc   :  { %1593 = vpush %v1276_v11 }
 0x32d   :  { %s1594_s30 = spop %1593 }
 0x32e   :  { %v1278_v12 = vstv %s1594_s30 }
 0x32f   :  { %1279 = vst [vmem:[#allocation2] sm:$0xff] %v1278_v12 }
 0x330   :  { %1648 = shalt.err (!%p1645_p4)
}
 0x331   :  { %s1649_s5 = scalar_lea.hbm %s2086_s7, 128 }
 0x332   :  { %p1650_p5 = scmp.ne.s32.totalorder %s2086_s7, %s1649_s5  ;;  %p1653_p6 = scmp.lt.u32.totalorder %s1649_s5, %s2086_s7 }
 0x334   :  { %p1655_p7 = pnand %p1653_p6, %p1650_p5 }
 0x336   :  { %1658 = shalt.err (!%p1655_p7)
}
 0x337   :  { %1289 = dma.vmem_to_hbm [thread:$0]  %s1287_s1, 128, %s2086_s7, [#allocation3]  }
 0x338   :  { %1659 = dma.done.wait [#allocation3], 128  }
 0x339   :  { %1660 = vsyncadd [#allocation3], 4294967168 }
 0x33a   :  { %1293 = vsyncpa [#allocation3], 1 }

</bundles_post_ra>
